<compile_context>
chip_gen: v5e
topology: v5e:2x2
jax: 0.10.0
libtpu: 0.0.40
codegen_flags: <defaults>
</compile_context>

<pallas_src>
import functools

import jax
import jax.numpy as jnp
from jax import lax
from jax.experimental import pallas as pl
from jax.experimental.pallas import tpu as pltpu

DEFAULT_MASK_DIST_OFFSET = 0.05


# ----------------------------------------------------------------------------
# Kernel 1: circle masking + fused global-average-pool
#   grid = (BA, BU); each step reads one (3, H*W) frame once and, for each of
#   the K balls, masks it and reduces it to per-channel means.  The masked
#   images themselves are only materialized when emit_masked=True.
# ----------------------------------------------------------------------------
def _mask_gap_kernel(params_ref, coords_ref, img_ref, *out_refs,
                     BU, K, inv_hw, emit_masked):
    feat_ref = out_refs[0]                                  # (K, 3, 1)
    masked_ref = out_refs[1] if emit_masked else None       # (K, 3, H*W)

    i = pl.program_id(0)                                    # batch
    j = pl.program_id(1)                                    # buffer frame

    img = img_ref[...]                                      # (3, H*W) loaded once, reused K times
    coords = coords_ref[...]                                # (2, H*W): row 0 = x, row 1 = y
    xs = coords[0:1, :]                                     # (1, H*W)
    ys = coords[1:2, :]

    base = (i * BU + j) * (K * 3)                           # flat offset into params (cx, cy, cr)
    for k in range(K):                                      # K is small & static -> unrolled
        cx = params_ref[base + 3 * k + 0]
        cy = params_ref[base + 3 * k + 1]
        cr = params_ref[base + 3 * k + 2] + DEFAULT_MASK_DIST_OFFSET
        cr2 = cr * cr                                       # scalar, hoisted off the VPU path
        dx = xs - cx
        dy = ys - cy
        inside = (dx * dx + dy * dy) <= cr2                 # (1, H*W) VPU compare
        masked = jnp.where(inside, img, 0.0)                # (3, H*W) broadcast select
        # fused GAP: per-channel mean of the masked frame (multiply, don't divide)
        feat_ref[k] = jnp.sum(masked, axis=1, keepdims=True) * inv_hw   # (3, 1) lane reduce (XLU)
        if emit_masked:
            masked_ref[k] = masked                          # lane-dense full-width store


def circle_mask_gap(imgs, circle_params, *, K, emit_masked=False):
    """imgs: (BA, BU, 3, H, W) f32; circle_params: (BA, BU, K, 3) f32 [cx, cy, cr].

    Returns:
      feats: (BA, BU, K, 3) f32 — per-(frame, ball) channel means of the masked frame.
      masked (only if emit_masked): (BA, K, BU*3, H, W) f32 — torch input_processed layout.
    """
    BA, BU, C, H, W = imgs.shape
    assert C == 3
    HW = H * W

    imgs_flat = imgs.reshape(BA, BU, 3, HW).astype(jnp.float32)      # lane-dense layout
    params_flat = circle_params.reshape(-1).astype(jnp.float32)      # flat 1-D -> minimal SMEM pad

    # precomputed pixel-centre coordinates; x varies fastest (matches the reshape order)
    xs = jnp.tile((jnp.arange(W, dtype=jnp.float32) + 0.5) / W, H)
    ys = jnp.repeat((jnp.arange(H, dtype=jnp.float32) + 0.5) / H, W)
    coords = jnp.stack([xs, ys], axis=0)                             # (2, HW)

    feat_shape = jax.ShapeDtypeStruct((BA, BU, K, 3, 1), jnp.float32)
    feat_spec = pl.BlockSpec((pl.Squeezed(), pl.Squeezed(), K, 3, 1),
                             lambda i, j, p: (i, j, 0, 0, 0))
    if emit_masked:
        # NOTE: on v5e this output could be bf16 to halve store bytes if downstream
        # tolerates it; kept f32 here because it is only used for verification.
        out_shape = (feat_shape,
                     jax.ShapeDtypeStruct((BA, BU, K, 3, HW), jnp.float32))
        out_specs = (feat_spec,
                     pl.BlockSpec((pl.Squeezed(), pl.Squeezed(), K, 3, HW),
                                  lambda i, j, p: (i, j, 0, 0, 0)))
    else:
        out_shape = feat_shape
        out_specs = feat_spec

    kernel = functools.partial(_mask_gap_kernel, BU=BU, K=K,
                               inv_hw=1.0 / float(HW), emit_masked=emit_masked)
    outs = pl.pallas_call(
        kernel,
        out_shape=out_shape,
        grid_spec=pltpu.PrefetchScalarGridSpec(
            num_scalar_prefetch=1,                                   # circle params -> SMEM
            grid=(BA, BU),
            in_specs=[
                pl.BlockSpec((2, HW), lambda i, j, p: (0, 0)),       # coords, block const across grid
                pl.BlockSpec((pl.Squeezed(), pl.Squeezed(), 3, HW),
                             lambda i, j, p: (i, j, 0, 0)),          # one source frame, read once
            ],
            out_specs=out_specs),
        compiler_params=pltpu.CompilerParams(
            dimension_semantics=("parallel", "parallel"),            # shards over v7x's 2 TCs
            vmem_limit_bytes=32 * 1024 * 1024),
    )(params_flat, coords, imgs_flat)

    if emit_masked:
        feats5, masked5 = outs
        feats = feats5[..., 0]                                       # (BA, BU, K, 3)
        masked = jnp.transpose(masked5, (0, 2, 1, 3, 4)).reshape(BA, K, BU * 3, H, W)
        return feats, masked
    return outs[..., 0]


# ----------------------------------------------------------------------------
# Kernel 2: classifier head on the tiny feature matrix
#   logits on the VPU (per-class broadcast-multiply + lane reduce), then
#   log_softmax / cross-entropy (crit), argmax (label_pred), accuracy (label_acc).
# ----------------------------------------------------------------------------
def _head_kernel(feat_ref, wt_ref, b_ref, lab_ref, loss_ref, acc_ref, pred_ref, *, NC):
    feat = feat_ref[...]                                   # (N, C)
    N = feat.shape[0]

    class_iota = lax.broadcasted_iota(jnp.int32, (N, NC), 1)
    logits = jnp.zeros((N, NC), jnp.float32)
    for o in range(NC):                                    # NC small & static -> unrolled
        w_row = wt_ref[pl.ds(o, 1), :]                     # (1, C) sublane-broadcast row
        col = jnp.sum(feat * w_row, axis=1, keepdims=True)  # (N, 1) lane reduce
        logits = logits + jnp.where(class_iota == o, col, 0.0)
    logits = logits + b_ref[...]                           # (N, NC)

    # log_softmax (label_pred) and cross-entropy (crit)
    m = jnp.max(logits, axis=1, keepdims=True)
    lse = jnp.log(jnp.sum(jnp.exp(logits - m), axis=1, keepdims=True)) + m
    logp = logits - lse

    labels = lab_ref[...]                                  # (N, 1) int32
    labels_safe = jnp.clip(labels, 0, NC - 1)              # guard out-of-range labels
    onehot = class_iota == labels_safe
    nll = -jnp.sum(jnp.where(onehot, logp, 0.0), axis=1, keepdims=True)   # (N, 1)

    # loss: labels >= NC are excluded from the average (torch CE would raise on them)
    valid_loss = jnp.logical_and(labels >= 0, labels < NC).astype(jnp.float32)
    vsum_loss = jnp.sum(valid_loss, keepdims=True)
    loss_ref[...] = jnp.sum(valid_loss * nll, keepdims=True) / (vsum_loss + 1e-10)

    # argmax (first occurrence); clamp guards an all-non-finite row
    pred = jnp.min(jnp.where(logits == m, class_iota, NC), axis=1, keepdims=True)
    pred = jnp.minimum(pred, NC - 1)
    pred_ref[...] = pred

    # accuracy: valid := label >= 0, exactly as PerceptualModuleBase.label_acc
    valid_acc = (labels >= 0).astype(jnp.float32)
    vsum_acc = jnp.sum(valid_acc, keepdims=True)
    correct = (pred == labels).astype(jnp.float32)
    acc_ref[...] = jnp.sum(valid_acc * correct, keepdims=True) / (vsum_acc + 1e-10)


def perceptual_head(feat, labels, w, b):
    """feat: (N, C_Final) f32; labels: (N,) int; w: (C_Final, NC); b: (NC,)."""
    N, _ = feat.shape
    NC = w.shape[1]
    wt = jnp.transpose(w).astype(jnp.float32)              # (NC, C): rows broadcast in-kernel
    b2d = b.reshape(1, NC).astype(jnp.float32)
    lab2d = labels.reshape(N, 1).astype(jnp.int32)

    vmem = pl.BlockSpec(memory_space=pltpu.MemorySpace.VMEM)
    loss, acc, pred = pl.pallas_call(
        functools.partial(_head_kernel, NC=NC),
        out_shape=(jax.ShapeDtypeStruct((1, 1), jnp.float32),   # loss
                   jax.ShapeDtypeStruct((1, 1), jnp.float32),   # acc
                   jax.ShapeDtypeStruct((N, 1), jnp.int32)),    # prediction
        in_specs=[vmem, vmem, vmem, vmem],
        out_specs=(vmem, vmem, vmem),
    )(feat.astype(jnp.float32), wt, b2d, lab2d)
    return loss[0, 0], acc[0, 0], pred[:, 0]


# ----------------------------------------------------------------------------
# Full training-mode forward of PerceptualModule
# ----------------------------------------------------------------------------
def perceptual_module_forward(img_data, state_label, w, b, *, K):
    """Training-mode forward.  Returns (loss, acc)."""
    BA, BU, _, H, W = img_data.shape
    # circle parameters per (batch, frame, ball): features [0, 1, -2] = cx, cy, cr
    circle_params = jnp.stack(
        [state_label[..., 0], state_label[..., 1], state_label[..., -2]], axis=-1)
    # GAP is fused into kernel 1, so the masked image tensor never hits HBM here
    feats = circle_mask_gap(img_data, circle_params, K=K, emit_masked=False)   # (BA,BU,K,3)
    # feature layout matches input_processed channel order: c = j*3 + ch
    feat_mat = jnp.transpose(feats, (0, 2, 1, 3)).reshape(BA * K, BU * 3)
    # output_processed[i,k] = output_data[i, j, k, -1] with last j winning (j = BU-1)
    labels = state_label[:, BU - 1, :, -1].astype(jnp.int32).reshape(BA * K)
    loss, acc, _pred = perceptual_head(feat_mat, labels, w, b)
    return loss, acc


if __name__ == "__main__":
    # Small deterministic setup
    BA, BU, K = 2, 4, 3          # batch, buffer_size, max_num_balls
    H = W = 16
    NUM_CLASSES = 8
    C_FINAL = BU * 3             # include_images=True, include_optical_flow=False

    key = jax.random.PRNGKey(0)
    k_img, k_cx, k_cy, k_cr, k_lab, k_w, k_b = jax.random.split(key, 7)

    img_data = jax.random.uniform(k_img, (BA, BU, 3, H, W), dtype=jnp.float32)
    cx = jax.random.uniform(k_cx, (BA, BU, K), minval=0.2, maxval=0.8)
    cy = jax.random.uniform(k_cy, (BA, BU, K), minval=0.2, maxval=0.8)
    cr = jax.random.uniform(k_cr, (BA, BU, K), minval=0.15, maxval=0.3)
    lab = jax.random.randint(k_lab, (BA, BU, K), 0, NUM_CLASSES).astype(jnp.float32)
    dummy = jnp.zeros((BA, BU, K), jnp.float32)
    # state_label features: [cx, cy, dummy, cr(=idx -2), class_label(=idx -1)]
    state_label = jnp.stack([cx, cy, dummy, cr, lab], axis=-1)   # (BA, BU, K, 5)

    # deterministic synthetic net_perceptual parameters
    w = jax.random.normal(k_w, (C_FINAL, NUM_CLASSES), dtype=jnp.float32) * 0.1
    b = jax.random.normal(k_b, (NUM_CLASSES,), dtype=jnp.float32) * 0.01

    loss, acc = jax.jit(
        functools.partial(perceptual_module_forward, K=K))(img_data, state_label, w, b)
    jax.block_until_ready((loss, acc))

    # -------- pure-JAX reference checks --------
    ysr = (jnp.arange(H, dtype=jnp.float32)[:, None] + 0.5) / H
    xsr = (jnp.arange(W, dtype=jnp.float32)[None, :] + 0.5) / W
    ref = jnp.zeros((BA, K, C_FINAL, H, W), jnp.float32)
    for i in range(BA):
        for j in range(BU):
            for k in range(K):
                ccx = state_label[i, j, k, 0]
                ccy = state_label[i, j, k, 1]
                ccr = state_label[i, j, k, -2] + DEFAULT_MASK_DIST_OFFSET
                inside = ((xsr - ccx) ** 2 + (ysr - ccy) ** 2) <= ccr * ccr
                ref = ref.at[i, k, j * 3:(j + 1) * 3].set(
                    jnp.where(inside[None], img_data[i, j], 0.0))

    circle_params = jnp.stack(
        [state_label[..., 0], state_label[..., 1], state_label[..., -2]], axis=-1)
    feats_chk, masked_chk = circle_mask_gap(img_data, circle_params, K=K, emit_masked=True)
    assert jnp.allclose(masked_chk, ref, atol=1e-5), "mask kernel mismatch"

    ref_feat = ref.reshape(BA * K, C_FINAL, H * W).mean(axis=-1)
    feat_mat_chk = jnp.transpose(feats_chk, (0, 2, 1, 3)).reshape(BA * K, C_FINAL)
    assert jnp.allclose(feat_mat_chk, ref_feat, atol=1e-5), "fused GAP mismatch"

    labels = state_label[:, BU - 1, :, -1].astype(jnp.int32).reshape(BA * K)
    logits_ref = ref_feat @ w + b
    logp_ref = jax.nn.log_softmax(logits_ref, axis=-1)
    nll_ref = -jnp.take_along_axis(logp_ref, labels[:, None], axis=1)[:, 0]
    validf = (labels >= 0).astype(jnp.float32)
    loss_ref = jnp.sum(validf * nll_ref) / (jnp.sum(validf) + 1e-10)
    pred_ref = jnp.argmax(logits_ref, axis=1)
    acc_ref = jnp.sum(validf * (pred_ref == labels).astype(jnp.float32)) / (jnp.sum(validf) + 1e-10)

    assert jnp.isfinite(loss) and jnp.isfinite(acc)
    assert abs(float(loss) - float(loss_ref)) < 1e-4, "loss mismatch"
    assert abs(float(acc) - float(acc_ref)) < 1e-5, "acc mismatch"

    print("KERNEL_OK")
</pallas_src>

<mosaic_0001>
module attributes {stable_mosaic.version = 11 : i64} {
  func.func @_mask_gap_kernel(%arg0: i32, %arg1: i32, %arg2: memref<72xf32, #tpu.memory_space<smem>>, %arg3: memref<2x256xf32, #tpu.memory_space<vmem>>, %arg4: memref<1x1x3x256xf32, #tpu.memory_space<vmem>>, %arg5: memref<1x1x3x3x1xf32, #tpu.memory_space<vmem>>) attributes {dimension_semantics = [#tpu.dimension_semantics<parallel>, #tpu.dimension_semantics<parallel>], iteration_bounds = array<i64: 2, 4>, scalar_prefetch = 1 : i64, scratch_operands = 0 : i64, tpu.core_type = #tpu.core_type<tc>, window_params = [{pipeline_mode = #tpu.pipeline_mode<synchronous>, transform_indices = @transform_0, window_bounds = array<i64: 2, 256>}, {transform_indices = @transform_1, window_bounds = array<i64: 1, 1, 3, 256>}, {transform_indices = @transform_2, window_bounds = array<i64: 1, 1, 3, 3, 1>}]} {
    %c0 = arith.constant 0 : index
    %c0_0 = arith.constant 0 : index
    %c0_1 = arith.constant 0 : index
    %c0_2 = arith.constant 0 : index
    %0 = vector.load %arg4[%c0, %c0_0, %c0_1, %c0_2] : memref<1x1x3x256xf32, #tpu.memory_space<vmem>>, vector<1x1x3x256xf32>
    %1 = vector.shape_cast %0 : vector<1x1x3x256xf32> to vector<3x256xf32>
    %c0_3 = arith.constant 0 : index
    %c0_4 = arith.constant 0 : index
    %2 = vector.load %arg3[%c0_3, %c0_4] : memref<2x256xf32, #tpu.memory_space<vmem>>, vector<2x256xf32>
    %3 = vector.extract_strided_slice %2 {offsets = [0, 0], sizes = [1, 256], strides = [1, 1]} : vector<2x256xf32> to vector<1x256xf32>
    %4 = vector.extract_strided_slice %2 {offsets = [1, 0], sizes = [1, 256], strides = [1, 1]} : vector<2x256xf32> to vector<1x256xf32>
    %c4_i32 = arith.constant 4 : i32
    %5 = arith.muli %arg0, %c4_i32 : i32
    %6 = arith.addi %5, %arg1 : i32
    %c9_i32 = arith.constant 9 : i32
    %7 = arith.muli %6, %c9_i32 : i32
    %c0_i32 = arith.constant 0 : i32
    %8 = arith.addi %7, %c0_i32 : i32
    %c0_i32_5 = arith.constant 0 : i32
    %9 = arith.addi %8, %c0_i32_5 : i32
    %10 = arith.index_cast %9 : i32 to index
    %11 = memref.load %arg2[%10] : memref<72xf32, #tpu.memory_space<smem>>
    %c0_i32_6 = arith.constant 0 : i32
    %12 = arith.addi %7, %c0_i32_6 : i32
    %c1_i32 = arith.constant 1 : i32
    %13 = arith.addi %12, %c1_i32 : i32
    %14 = arith.index_cast %13 : i32 to index
    %15 = memref.load %arg2[%14] : memref<72xf32, #tpu.memory_space<smem>>
    %c0_i32_7 = arith.constant 0 : i32
    %16 = arith.addi %7, %c0_i32_7 : i32
    %c2_i32 = arith.constant 2 : i32
    %17 = arith.addi %16, %c2_i32 : i32
    %18 = arith.index_cast %17 : i32 to index
    %19 = memref.load %arg2[%18] : memref<72xf32, #tpu.memory_space<smem>>
    %cst = arith.constant 5.000000e-02 : f32
    %20 = arith.addf %19, %cst : f32
    %21 = arith.mulf %20, %20 : f32
    %22 = vector.broadcast %11 : f32 to vector<1x256xf32>
    %23 = arith.subf %3, %22 : vector<1x256xf32>
    %24 = vector.broadcast %15 : f32 to vector<1x256xf32>
    %25 = arith.subf %4, %24 : vector<1x256xf32>
    %26 = arith.mulf %23, %23 : vector<1x256xf32>
    %27 = arith.mulf %25, %25 : vector<1x256xf32>
    %28 = arith.addf %26, %27 : vector<1x256xf32>
    %29 = vector.broadcast %21 : f32 to vector<1x256xf32>
    %30 = arith.cmpf ole, %28, %29 : vector<1x256xf32>
    %cst_8 = arith.constant 0.000000e+00 : f32
    %31 = vector.shape_cast %30 : vector<1x256xi1> to vector<1x256xi1>
    %32 = vector.broadcast %31 : vector<1x256xi1> to vector<3x256xi1>
    %33 = vector.broadcast %cst_8 : f32 to vector<3x256xf32>
    %34 = arith.select %32, %1, %33 : vector<3x256xi1>, vector<3x256xf32>
    %cst_9 = arith.constant dense<0.000000e+00> : vector<3xf32>
    %35 = vector.multi_reduction <add>, %34, %cst_9 [1] : vector<3x256xf32> to vector<3xf32>
    %36 = vector.shape_cast %35 : vector<3xf32> to vector<3x1xf32>
    %cst_10 = arith.constant 3.906250e-03 : f32
    %37 = vector.broadcast %cst_10 : f32 to vector<3x1xf32>
    %38 = arith.mulf %36, %37 : vector<3x1xf32>
    %c0_11 = arith.constant 0 : index
    %c0_12 = arith.constant 0 : index
    %c0_13 = arith.constant 0 : index
    %c0_14 = arith.constant 0 : index
    %c0_15 = arith.constant 0 : index
    %39 = vector.load %arg5[%c0_11, %c0_12, %c0_13, %c0_14, %c0_15] : memref<1x1x3x3x1xf32, #tpu.memory_space<vmem>>, vector<1x1x1x3x1xf32>
    %40 = vector.shape_cast %39 : vector<1x1x1x3x1xf32> to vector<3x1xf32>
    %41 = vector.shape_cast %38 : vector<3x1xf32> to vector<1x1x1x3x1xf32>
    tpu.vector_store %arg5[%c0_11, %c0_12, %c0_13, %c0_14, %c0_15], %41 {strides = array<i32>} : memref<1x1x3x3x1xf32, #tpu.memory_space<vmem>>, vector<1x1x1x3x1xf32>,
    %c3_i32 = arith.constant 3 : i32
    %42 = arith.addi %7, %c3_i32 : i32
    %c0_i32_16 = arith.constant 0 : i32
    %43 = arith.addi %42, %c0_i32_16 : i32
    %44 = arith.index_cast %43 : i32 to index
    %45 = memref.load %arg2[%44] : memref<72xf32, #tpu.memory_space<smem>>
    %c3_i32_17 = arith.constant 3 : i32
    %46 = arith.addi %7, %c3_i32_17 : i32
    %c1_i32_18 = arith.constant 1 : i32
    %47 = arith.addi %46, %c1_i32_18 : i32
    %48 = arith.index_cast %47 : i32 to index
    %49 = memref.load %arg2[%48] : memref<72xf32, #tpu.memory_space<smem>>
    %c3_i32_19 = arith.constant 3 : i32
    %50 = arith.addi %7, %c3_i32_19 : i32
    %c2_i32_20 = arith.constant 2 : i32
    %51 = arith.addi %50, %c2_i32_20 : i32
    %52 = arith.index_cast %51 : i32 to index
    %53 = memref.load %arg2[%52] : memref<72xf32, #tpu.memory_space<smem>>
    %cst_21 = arith.constant 5.000000e-02 : f32
    %54 = arith.addf %53, %cst_21 : f32
    %55 = arith.mulf %54, %54 : f32
    %56 = vector.broadcast %45 : f32 to vector<1x256xf32>
    %57 = arith.subf %3, %56 : vector<1x256xf32>
    %58 = vector.broadcast %49 : f32 to vector<1x256xf32>
    %59 = arith.subf %4, %58 : vector<1x256xf32>
    %60 = arith.mulf %57, %57 : vector<1x256xf32>
    %61 = arith.mulf %59, %59 : vector<1x256xf32>
    %62 = arith.addf %60, %61 : vector<1x256xf32>
    %63 = vector.broadcast %55 : f32 to vector<1x256xf32>
    %64 = arith.cmpf ole, %62, %63 : vector<1x256xf32>
    %cst_22 = arith.constant 0.000000e+00 : f32
    %65 = vector.shape_cast %64 : vector<1x256xi1> to vector<1x256xi1>
    %66 = vector.broadcast %65 : vector<1x256xi1> to vector<3x256xi1>
    %67 = vector.broadcast %cst_22 : f32 to vector<3x256xf32>
    %68 = arith.select %66, %1, %67 : vector<3x256xi1>, vector<3x256xf32>
    %cst_23 = arith.constant dense<0.000000e+00> : vector<3xf32>
    %69 = vector.multi_reduction <add>, %68, %cst_23 [1] : vector<3x256xf32> to vector<3xf32>
    %70 = vector.shape_cast %69 : vector<3xf32> to vector<3x1xf32>
    %cst_24 = arith.constant 3.906250e-03 : f32
    %71 = vector.broadcast %cst_24 : f32 to vector<3x1xf32>
    %72 = arith.mulf %70, %71 : vector<3x1xf32>
    %c0_25 = arith.constant 0 : index
    %c0_26 = arith.constant 0 : index
    %c1 = arith.constant 1 : index
    %c0_27 = arith.constant 0 : index
    %c0_28 = arith.constant 0 : index
    %73 = vector.load %arg5[%c0_25, %c0_26, %c1, %c0_27, %c0_28] : memref<1x1x3x3x1xf32, #tpu.memory_space<vmem>>, vector<1x1x1x3x1xf32>
    %74 = vector.shape_cast %73 : vector<1x1x1x3x1xf32> to vector<3x1xf32>
    %75 = vector.shape_cast %72 : vector<3x1xf32> to vector<1x1x1x3x1xf32>
    tpu.vector_store %arg5[%c0_25, %c0_26, %c1, %c0_27, %c0_28], %75 {strides = array<i32>} : memref<1x1x3x3x1xf32, #tpu.memory_space<vmem>>, vector<1x1x1x3x1xf32>,
    %c6_i32 = arith.constant 6 : i32
    %76 = arith.addi %7, %c6_i32 : i32
    %c0_i32_29 = arith.constant 0 : i32
    %77 = arith.addi %76, %c0_i32_29 : i32
    %78 = arith.index_cast %77 : i32 to index
    %79 = memref.load %arg2[%78] : memref<72xf32, #tpu.memory_space<smem>>
    %c6_i32_30 = arith.constant 6 : i32
    %80 = arith.addi %7, %c6_i32_30 : i32
    %c1_i32_31 = arith.constant 1 : i32
    %81 = arith.addi %80, %c1_i32_31 : i32
    %82 = arith.index_cast %81 : i32 to index
    %83 = memref.load %arg2[%82] : memref<72xf32, #tpu.memory_space<smem>>
    %c6_i32_32 = arith.constant 6 : i32
    %84 = arith.addi %7, %c6_i32_32 : i32
    %c2_i32_33 = arith.constant 2 : i32
    %85 = arith.addi %84, %c2_i32_33 : i32
    %86 = arith.index_cast %85 : i32 to index
    %87 = memref.load %arg2[%86] : memref<72xf32, #tpu.memory_space<smem>>
    %cst_34 = arith.constant 5.000000e-02 : f32
    %88 = arith.addf %87, %cst_34 : f32
    %89 = arith.mulf %88, %88 : f32
    %90 = vector.broadcast %79 : f32 to vector<1x256xf32>
    %91 = arith.subf %3, %90 : vector<1x256xf32>
    %92 = vector.broadcast %83 : f32 to vector<1x256xf32>
    %93 = arith.subf %4, %92 : vector<1x256xf32>
    %94 = arith.mulf %91, %91 : vector<1x256xf32>
    %95 = arith.mulf %93, %93 : vector<1x256xf32>
    %96 = arith.addf %94, %95 : vector<1x256xf32>
    %97 = vector.broadcast %89 : f32 to vector<1x256xf32>
    %98 = arith.cmpf ole, %96, %97 : vector<1x256xf32>
    %cst_35 = arith.constant 0.000000e+00 : f32
    %99 = vector.shape_cast %98 : vector<1x256xi1> to vector<1x256xi1>
    %100 = vector.broadcast %99 : vector<1x256xi1> to vector<3x256xi1>
    %101 = vector.broadcast %cst_35 : f32 to vector<3x256xf32>
    %102 = arith.select %100, %1, %101 : vector<3x256xi1>, vector<3x256xf32>
    %cst_36 = arith.constant dense<0.000000e+00> : vector<3xf32>
    %103 = vector.multi_reduction <add>, %102, %cst_36 [1] : vector<3x256xf32> to vector<3xf32>
    %104 = vector.shape_cast %103 : vector<3xf32> to vector<3x1xf32>
    %cst_37 = arith.constant 3.906250e-03 : f32
    %105 = vector.broadcast %cst_37 : f32 to vector<3x1xf32>
    %106 = arith.mulf %104, %105 : vector<3x1xf32>
    %c0_38 = arith.constant 0 : index
    %c0_39 = arith.constant 0 : index
    %c2 = arith.constant 2 : index
    %c0_40 = arith.constant 0 : index
    %c0_41 = arith.constant 0 : index
    %107 = vector.load %arg5[%c0_38, %c0_39, %c2, %c0_40, %c0_41] : memref<1x1x3x3x1xf32, #tpu.memory_space<vmem>>, vector<1x1x1x3x1xf32>
    %108 = vector.shape_cast %107 : vector<1x1x1x3x1xf32> to vector<3x1xf32>
    %109 = vector.shape_cast %106 : vector<3x1xf32> to vector<1x1x1x3x1xf32>
    tpu.vector_store %arg5[%c0_38, %c0_39, %c2, %c0_40, %c0_41], %109 {strides = array<i32>} : memref<1x1x3x3x1xf32, #tpu.memory_space<vmem>>, vector<1x1x1x3x1xf32>,
    return
  }
  func.func @transform_0(%arg0: i32, %arg1: i32, %arg2: memref<72xf32, #tpu.memory_space<smem>>) -> (i32, i32) {
    %c0_i32 = arith.constant 0 : i32
    %c0_i32_0 = arith.constant 0 : i32
    %c0_i32_1 = arith.constant 0 : i32
    return %c0_i32, %c0_i32_0 : i32, i32
  }
  func.func @transform_1(%arg0: i32, %arg1: i32, %arg2: memref<72xf32, #tpu.memory_space<smem>>) -> (i32, i32, i32, i32) {
    %c0_i32 = arith.constant 0 : i32
    %c0_i32_0 = arith.constant 0 : i32
    %c0_i32_1 = arith.constant 0 : i32
    return %arg0, %arg1, %c0_i32, %c0_i32_0 : i32, i32, i32, i32
  }
  func.func @transform_2(%arg0: i32, %arg1: i32, %arg2: memref<72xf32, #tpu.memory_space<smem>>) -> (i32, i32, i32, i32, i32) {
    %c0_i32 = arith.constant 0 : i32
    %c0_i32_0 = arith.constant 0 : i32
    %c0_i32_1 = arith.constant 0 : i32
    %c0_i32_2 = arith.constant 0 : i32
    return %arg0, %arg1, %c0_i32, %c0_i32_0, %c0_i32_1 : i32, i32, i32, i32, i32
  }
}

module attributes {stable_mosaic.version = 11 : i64} {
  func.func @_head_kernel(%arg0: memref<6x12xf32, #tpu.memory_space<vmem>>, %arg1: memref<8x12xf32, #tpu.memory_space<vmem>>, %arg2: memref<1x8xf32, #tpu.memory_space<vmem>>, %arg3: memref<6x1xi32, #tpu.memory_space<vmem>>, %arg4: memref<1x1xf32, #tpu.memory_space<vmem>>, %arg5: memref<1x1xf32, #tpu.memory_space<vmem>>, %arg6: memref<6x1xi32, #tpu.memory_space<vmem>>) attributes {dimension_semantics = [], scalar_prefetch = 0 : i64, scratch_operands = 0 : i64, tpu.core_type = #tpu.core_type<tc>} {
    %c0 = arith.constant 0 : index
    %c0_0 = arith.constant 0 : index
    %0 = vector.load %arg0[%c0, %c0_0] : memref<6x12xf32, #tpu.memory_space<vmem>>, vector<6x12xf32>
    %1 = tpu.iota {dimensions = array<i32: 1>} : vector<6x8xi32>
    %cst = arith.constant 0.000000e+00 : f32
    %2 = vector.broadcast %cst : f32 to vector<6x8xf32>
    %c0_1 = arith.constant 0 : index
    %c0_2 = arith.constant 0 : index
    %3 = vector.load %arg1[%c0_1, %c0_2] : memref<8x12xf32, #tpu.memory_space<vmem>>, vector<1x12xf32>
    %4 = vector.broadcast %3 : vector<1x12xf32> to vector<6x12xf32>
    %5 = arith.mulf %0, %4 : vector<6x12xf32>
    %cst_3 = arith.constant dense<0.000000e+00> : vector<6xf32>
    %6 = vector.multi_reduction <add>, %5, %cst_3 [1] : vector<6x12xf32> to vector<6xf32>
    %7 = vector.shape_cast %6 : vector<6xf32> to vector<6x1xf32>
    %c0_i32 = arith.constant 0 : i32
    %8 = vector.broadcast %c0_i32 : i32 to vector<6x8xi32>
    %9 = arith.cmpi eq, %1, %8 : vector<6x8xi32>
    %cst_4 = arith.constant 0.000000e+00 : f32
    %10 = vector.shape_cast %7 : vector<6x1xf32> to vector<6x1xf32>
    %11 = vector.broadcast %10 : vector<6x1xf32> to vector<6x8xf32>
    %12 = vector.broadcast %cst_4 : f32 to vector<6x8xf32>
    %13 = arith.select %9, %11, %12 : vector<6x8xi1>, vector<6x8xf32>
    %14 = arith.addf %2, %13 : vector<6x8xf32>
    %c1 = arith.constant 1 : index
    %c0_5 = arith.constant 0 : index
    %15 = vector.load %arg1[%c1, %c0_5] : memref<8x12xf32, #tpu.memory_space<vmem>>, vector<1x12xf32>
    %16 = vector.broadcast %15 : vector<1x12xf32> to vector<6x12xf32>
    %17 = arith.mulf %0, %16 : vector<6x12xf32>
    %cst_6 = arith.constant dense<0.000000e+00> : vector<6xf32>
    %18 = vector.multi_reduction <add>, %17, %cst_6 [1] : vector<6x12xf32> to vector<6xf32>
    %19 = vector.shape_cast %18 : vector<6xf32> to vector<6x1xf32>
    %c1_i32 = arith.constant 1 : i32
    %20 = vector.broadcast %c1_i32 : i32 to vector<6x8xi32>
    %21 = arith.cmpi eq, %1, %20 : vector<6x8xi32>
    %cst_7 = arith.constant 0.000000e+00 : f32
    %22 = vector.shape_cast %19 : vector<6x1xf32> to vector<6x1xf32>
    %23 = vector.broadcast %22 : vector<6x1xf32> to vector<6x8xf32>
    %24 = vector.broadcast %cst_7 : f32 to vector<6x8xf32>
    %25 = arith.select %21, %23, %24 : vector<6x8xi1>, vector<6x8xf32>
    %26 = arith.addf %14, %25 : vector<6x8xf32>
    %c2 = arith.constant 2 : index
    %c0_8 = arith.constant 0 : index
    %27 = vector.load %arg1[%c2, %c0_8] : memref<8x12xf32, #tpu.memory_space<vmem>>, vector<1x12xf32>
    %28 = vector.broadcast %27 : vector<1x12xf32> to vector<6x12xf32>
    %29 = arith.mulf %0, %28 : vector<6x12xf32>
    %cst_9 = arith.constant dense<0.000000e+00> : vector<6xf32>
    %30 = vector.multi_reduction <add>, %29, %cst_9 [1] : vector<6x12xf32> to vector<6xf32>
    %31 = vector.shape_cast %30 : vector<6xf32> to vector<6x1xf32>
    %c2_i32 = arith.constant 2 : i32
    %32 = vector.broadcast %c2_i32 : i32 to vector<6x8xi32>
    %33 = arith.cmpi eq, %1, %32 : vector<6x8xi32>
    %cst_10 = arith.constant 0.000000e+00 : f32
    %34 = vector.shape_cast %31 : vector<6x1xf32> to vector<6x1xf32>
    %35 = vector.broadcast %34 : vector<6x1xf32> to vector<6x8xf32>
    %36 = vector.broadcast %cst_10 : f32 to vector<6x8xf32>
    %37 = arith.select %33, %35, %36 : vector<6x8xi1>, vector<6x8xf32>
    %38 = arith.addf %26, %37 : vector<6x8xf32>
    %c3 = arith.constant 3 : index
    %c0_11 = arith.constant 0 : index
    %39 = vector.load %arg1[%c3, %c0_11] : memref<8x12xf32, #tpu.memory_space<vmem>>, vector<1x12xf32>
    %40 = vector.broadcast %39 : vector<1x12xf32> to vector<6x12xf32>
    %41 = arith.mulf %0, %40 : vector<6x12xf32>
    %cst_12 = arith.constant dense<0.000000e+00> : vector<6xf32>
    %42 = vector.multi_reduction <add>, %41, %cst_12 [1] : vector<6x12xf32> to vector<6xf32>
    %43 = vector.shape_cast %42 : vector<6xf32> to vector<6x1xf32>
    %c3_i32 = arith.constant 3 : i32
    %44 = vector.broadcast %c3_i32 : i32 to vector<6x8xi32>
    %45 = arith.cmpi eq, %1, %44 : vector<6x8xi32>
    %cst_13 = arith.constant 0.000000e+00 : f32
    %46 = vector.shape_cast %43 : vector<6x1xf32> to vector<6x1xf32>
    %47 = vector.broadcast %46 : vector<6x1xf32> to vector<6x8xf32>
    %48 = vector.broadcast %cst_13 : f32 to vector<6x8xf32>
    %49 = arith.select %45, %47, %48 : vector<6x8xi1>, vector<6x8xf32>
    %50 = arith.addf %38, %49 : vector<6x8xf32>
    %c4 = arith.constant 4 : index
    %c0_14 = arith.constant 0 : index
    %51 = vector.load %arg1[%c4, %c0_14] : memref<8x12xf32, #tpu.memory_space<vmem>>, vector<1x12xf32>
    %52 = vector.broadcast %51 : vector<1x12xf32> to vector<6x12xf32>
    %53 = arith.mulf %0, %52 : vector<6x12xf32>
    %cst_15 = arith.constant dense<0.000000e+00> : vector<6xf32>
    %54 = vector.multi_reduction <add>, %53, %cst_15 [1] : vector<6x12xf32> to vector<6xf32>
    %55 = vector.shape_cast %54 : vector<6xf32> to vector<6x1xf32>
    %c4_i32 = arith.constant 4 : i32
    %56 = vector.broadcast %c4_i32 : i32 to vector<6x8xi32>
    %57 = arith.cmpi eq, %1, %56 : vector<6x8xi32>
    %cst_16 = arith.constant 0.000000e+00 : f32
    %58 = vector.shape_cast %55 : vector<6x1xf32> to vector<6x1xf32>
    %59 = vector.broadcast %58 : vector<6x1xf32> to vector<6x8xf32>
    %60 = vector.broadcast %cst_16 : f32 to vector<6x8xf32>
    %61 = arith.select %57, %59, %60 : vector<6x8xi1>, vector<6x8xf32>
    %62 = arith.addf %50, %61 : vector<6x8xf32>
    %c5 = arith.constant 5 : index
    %c0_17 = arith.constant 0 : index
    %63 = vector.load %arg1[%c5, %c0_17] : memref<8x12xf32, #tpu.memory_space<vmem>>, vector<1x12xf32>
    %64 = vector.broadcast %63 : vector<1x12xf32> to vector<6x12xf32>
    %65 = arith.mulf %0, %64 : vector<6x12xf32>
    %cst_18 = arith.constant dense<0.000000e+00> : vector<6xf32>
    %66 = vector.multi_reduction <add>, %65, %cst_18 [1] : vector<6x12xf32> to vector<6xf32>
    %67 = vector.shape_cast %66 : vector<6xf32> to vector<6x1xf32>
    %c5_i32 = arith.constant 5 : i32
    %68 = vector.broadcast %c5_i32 : i32 to vector<6x8xi32>
    %69 = arith.cmpi eq, %1, %68 : vector<6x8xi32>
    %cst_19 = arith.constant 0.000000e+00 : f32
    %70 = vector.shape_cast %67 : vector<6x1xf32> to vector<6x1xf32>
    %71 = vector.broadcast %70 : vector<6x1xf32> to vector<6x8xf32>
    %72 = vector.broadcast %cst_19 : f32 to vector<6x8xf32>
    %73 = arith.select %69, %71, %72 : vector<6x8xi1>, vector<6x8xf32>
    %74 = arith.addf %62, %73 : vector<6x8xf32>
    %c6 = arith.constant 6 : index
    %c0_20 = arith.constant 0 : index
    %75 = vector.load %arg1[%c6, %c0_20] : memref<8x12xf32, #tpu.memory_space<vmem>>, vector<1x12xf32>
    %76 = vector.broadcast %75 : vector<1x12xf32> to vector<6x12xf32>
    %77 = arith.mulf %0, %76 : vector<6x12xf32>
    %cst_21 = arith.constant dense<0.000000e+00> : vector<6xf32>
    %78 = vector.multi_reduction <add>, %77, %cst_21 [1] : vector<6x12xf32> to vector<6xf32>
    %79 = vector.shape_cast %78 : vector<6xf32> to vector<6x1xf32>
    %c6_i32 = arith.constant 6 : i32
    %80 = vector.broadcast %c6_i32 : i32 to vector<6x8xi32>
    %81 = arith.cmpi eq, %1, %80 : vector<6x8xi32>
    %cst_22 = arith.constant 0.000000e+00 : f32
    %82 = vector.shape_cast %79 : vector<6x1xf32> to vector<6x1xf32>
    %83 = vector.broadcast %82 : vector<6x1xf32> to vector<6x8xf32>
    %84 = vector.broadcast %cst_22 : f32 to vector<6x8xf32>
    %85 = arith.select %81, %83, %84 : vector<6x8xi1>, vector<6x8xf32>
    %86 = arith.addf %74, %85 : vector<6x8xf32>
    %c7 = arith.constant 7 : index
    %c0_23 = arith.constant 0 : index
    %87 = vector.load %arg1[%c7, %c0_23] : memref<8x12xf32, #tpu.memory_space<vmem>>, vector<1x12xf32>
    %88 = vector.broadcast %87 : vector<1x12xf32> to vector<6x12xf32>
    %89 = arith.mulf %0, %88 : vector<6x12xf32>
    %cst_24 = arith.constant dense<0.000000e+00> : vector<6xf32>
    %90 = vector.multi_reduction <add>, %89, %cst_24 [1] : vector<6x12xf32> to vector<6xf32>
    %91 = vector.shape_cast %90 : vector<6xf32> to vector<6x1xf32>
    %c7_i32 = arith.constant 7 : i32
    %92 = vector.broadcast %c7_i32 : i32 to vector<6x8xi32>
    %93 = arith.cmpi eq, %1, %92 : vector<6x8xi32>
    %cst_25 = arith.constant 0.000000e+00 : f32
    %94 = vector.shape_cast %91 : vector<6x1xf32> to vector<6x1xf32>
    %95 = vector.broadcast %94 : vector<6x1xf32> to vector<6x8xf32>
    %96 = vector.broadcast %cst_25 : f32 to vector<6x8xf32>
    %97 = arith.select %93, %95, %96 : vector<6x8xi1>, vector<6x8xf32>
    %98 = arith.addf %86, %97 : vector<6x8xf32>
    %c0_26 = arith.constant 0 : index
    %c0_27 = arith.constant 0 : index
    %99 = vector.load %arg2[%c0_26, %c0_27] : memref<1x8xf32, #tpu.memory_space<vmem>>, vector<1x8xf32>
    %100 = vector.broadcast %99 : vector<1x8xf32> to vector<6x8xf32>
    %101 = arith.addf %98, %100 : vector<6x8xf32>
    %cst_28 = arith.constant dense<0xFF800000> : vector<6xf32>
    %102 = vector.multi_reduction <maximumf>, %101, %cst_28 [1] : vector<6x8xf32> to vector<6xf32>
    %103 = vector.shape_cast %102 : vector<6xf32> to vector<6x1xf32>
    %104 = vector.broadcast %103 : vector<6x1xf32> to vector<6x8xf32>
    %105 = arith.subf %101, %104 : vector<6x8xf32>
    %106 = math.exp %105 : vector<6x8xf32>
    %cst_29 = arith.constant dense<0.000000e+00> : vector<6xf32>
    %107 = vector.multi_reduction <add>, %106, %cst_29 [1] : vector<6x8xf32> to vector<6xf32>
    %108 = vector.shape_cast %107 : vector<6xf32> to vector<6x1xf32>
    %109 = math.log %108 : vector<6x1xf32>
    %110 = arith.addf %109, %103 : vector<6x1xf32>
    %111 = vector.broadcast %110 : vector<6x1xf32> to vector<6x8xf32>
    %112 = arith.subf %101, %111 : vector<6x8xf32>
    %c0_30 = arith.constant 0 : index
    %c0_31 = arith.constant 0 : index
    %113 = vector.load %arg3[%c0_30, %c0_31] : memref<6x1xi32, #tpu.memory_space<vmem>>, vector<6x1xi32>
    %c0_i32_32 = arith.constant 0 : i32
    %c7_i32_33 = arith.constant 7 : i32
    %114 = vector.broadcast %c0_i32_32 : i32 to vector<6x1xi32>
    %115 = arith.maxsi %114, %113 : vector<6x1xi32>
    %116 = vector.broadcast %c7_i32_33 : i32 to vector<6x1xi32>
    %117 = arith.minsi %116, %115 : vector<6x1xi32>
    %118 = vector.broadcast %117 : vector<6x1xi32> to vector<6x8xi32>
    %119 = arith.cmpi eq, %1, %118 : vector<6x8xi32>
    %cst_34 = arith.constant 0.000000e+00 : f32
    %120 = vector.broadcast %cst_34 : f32 to vector<6x8xf32>
    %121 = arith.select %119, %112, %120 : vector<6x8xi1>, vector<6x8xf32>
    %cst_35 = arith.constant dense<0.000000e+00> : vector<6xf32>
    %122 = vector.multi_reduction <add>, %121, %cst_35 [1] : vector<6x8xf32> to vector<6xf32>
    %123 = vector.shape_cast %122 : vector<6xf32> to vector<6x1xf32>
    %cst_36 = arith.constant 0.000000e+00 : f32
    %124 = vector.broadcast %cst_36 : f32 to vector<6x1xf32>
    %125 = arith.subf %124, %123 : vector<6x1xf32>
    %c0_i32_37 = arith.constant 0 : i32
    %126 = vector.broadcast %c0_i32_37 : i32 to vector<6x1xi32>
    %127 = arith.cmpi sge, %113, %126 : vector<6x1xi32>
    %c8_i32 = arith.constant 8 : i32
    %128 = vector.broadcast %c8_i32 : i32 to vector<6x1xi32>
    %129 = arith.cmpi slt, %113, %128 : vector<6x1xi32>
    %130 = arith.andi %127, %129 : vector<6x1xi1>
    %131 = arith.extui %130 : vector<6x1xi1> to vector<6x1xi32>
    %132 = arith.sitofp %131 : vector<6x1xi32> to vector<6x1xf32>
    %133 = vector.shape_cast %132 : vector<6x1xf32> to vector<1x6x1xf32>
    %cst_38 = arith.constant dense<0.000000e+00> : vector<1xf32>
    %134 = vector.multi_reduction <add>, %133, %cst_38 [1, 2] : vector<1x6x1xf32> to vector<1xf32>
    %135 = vector.shape_cast %134 : vector<1xf32> to vector<1x1x1xf32>
    %136 = vector.extract %135[0, 0, 0] : f32 from vector<1x1x1xf32>
    %137 = vector.broadcast %136 : f32 to vector<1x1xf32>
    %138 = arith.mulf %132, %125 : vector<6x1xf32>
    %139 = vector.shape_cast %138 : vector<6x1xf32> to vector<1x6x1xf32>
    %cst_39 = arith.constant dense<0.000000e+00> : vector<1xf32>
    %140 = vector.multi_reduction <add>, %139, %cst_39 [1, 2] : vector<1x6x1xf32> to vector<1xf32>
    %141 = vector.shape_cast %140 : vector<1xf32> to vector<1x1x1xf32>
    %142 = vector.extract %141[0, 0, 0] : f32 from vector<1x1x1xf32>
    %143 = vector.broadcast %142 : f32 to vector<1x1xf32>
    %cst_40 = arith.constant 1.000000e-10 : f32
    %144 = vector.broadcast %cst_40 : f32 to vector<1x1xf32>
    %145 = arith.addf %137, %144 : vector<1x1xf32>
    %146 = arith.divf %143, %145 : vector<1x1xf32>
    %c0_41 = arith.constant 0 : index
    %c0_42 = arith.constant 0 : index
    %147 = vector.load %arg4[%c0_41, %c0_42] : memref<1x1xf32, #tpu.memory_space<vmem>>, vector<1x1xf32>
    tpu.vector_store %arg4[%c0_41, %c0_42], %146 {strides = array<i32>} : memref<1x1xf32, #tpu.memory_space<vmem>>, vector<1x1xf32>,
    %148 = vector.broadcast %103 : vector<6x1xf32> to vector<6x8xf32>
    %149 = arith.cmpf oeq, %101, %148 : vector<6x8xf32>
    %c8_i32_43 = arith.constant 8 : i32
    %150 = vector.broadcast %c8_i32_43 : i32 to vector<6x8xi32>
    %151 = arith.select %149, %1, %150 : vector<6x8xi1>, vector<6x8xi32>
    %cst_44 = arith.constant dense<2147483647> : vector<6xi32>
    %152 = vector.multi_reduction <minsi>, %151, %cst_44 [1] : vector<6x8xi32> to vector<6xi32>
    %153 = vector.shape_cast %152 : vector<6xi32> to vector<6x1xi32>
    %c7_i32_45 = arith.constant 7 : i32
    %154 = vector.broadcast %c7_i32_45 : i32 to vector<6x1xi32>
    %155 = arith.minsi %153, %154 : vector<6x1xi32>
    %c0_46 = arith.constant 0 : index
    %c0_47 = arith.constant 0 : index
    %156 = vector.load %arg6[%c0_46, %c0_47] : memref<6x1xi32, #tpu.memory_space<vmem>>, vector<6x1xi32>
    tpu.vector_store %arg6[%c0_46, %c0_47], %155 {strides = array<i32>} : memref<6x1xi32, #tpu.memory_space<vmem>>, vector<6x1xi32>,
    %c0_i32_48 = arith.constant 0 : i32
    %157 = vector.broadcast %c0_i32_48 : i32 to vector<6x1xi32>
    %158 = arith.cmpi sge, %113, %157 : vector<6x1xi32>
    %159 = arith.extui %158 : vector<6x1xi1> to vector<6x1xi32>
    %160 = arith.sitofp %159 : vector<6x1xi32> to vector<6x1xf32>
    %161 = vector.shape_cast %160 : vector<6x1xf32> to vector<1x6x1xf32>
    %cst_49 = arith.constant dense<0.000000e+00> : vector<1xf32>
    %162 = vector.multi_reduction <add>, %161, %cst_49 [1, 2] : vector<1x6x1xf32> to vector<1xf32>
    %163 = vector.shape_cast %162 : vector<1xf32> to vector<1x1x1xf32>
    %164 = vector.extract %163[0, 0, 0] : f32 from vector<1x1x1xf32>
    %165 = vector.broadcast %164 : f32 to vector<1x1xf32>
    %166 = arith.cmpi eq, %155, %113 : vector<6x1xi32>
    %167 = arith.extui %166 : vector<6x1xi1> to vector<6x1xi32>
    %168 = arith.sitofp %167 : vector<6x1xi32> to vector<6x1xf32>
    %169 = arith.mulf %160, %168 : vector<6x1xf32>
    %170 = vector.shape_cast %169 : vector<6x1xf32> to vector<1x6x1xf32>
    %cst_50 = arith.constant dense<0.000000e+00> : vector<1xf32>
    %171 = vector.multi_reduction <add>, %170, %cst_50 [1, 2] : vector<1x6x1xf32> to vector<1xf32>
    %172 = vector.shape_cast %171 : vector<1xf32> to vector<1x1x1xf32>
    %173 = vector.extract %172[0, 0, 0] : f32 from vector<1x1x1xf32>
    %174 = vector.broadcast %173 : f32 to vector<1x1xf32>
    %cst_51 = arith.constant 1.000000e-10 : f32
    %175 = vector.broadcast %cst_51 : f32 to vector<1x1xf32>
    %176 = arith.addf %165, %175 : vector<1x1xf32>
    %177 = arith.divf %174, %176 : vector<1x1xf32>
    %c0_52 = arith.constant 0 : index
    %c0_53 = arith.constant 0 : index
    %178 = vector.load %arg5[%c0_52, %c0_53] : memref<1x1xf32, #tpu.memory_space<vmem>>, vector<1x1xf32>
    tpu.vector_store %arg5[%c0_52, %c0_53], %177 {strides = array<i32>} : memref<1x1xf32, #tpu.memory_space<vmem>>, vector<1x1xf32>,
    return
  }
}

</mosaic_0001>

<bundles_post_ra>
// kernel: tile.8
= control target key start
LH: loop header
LB: loop body
LE: loop exit
PB: predicated region body
PF: predicated region fallthrough
CT: control target
= control target key end

     0   :  { %s28_s0 = inlined_call_operand.vmem [shape: f32[16], index: 0, kind: input, shape index: {}]   ;;  %s29_s1 = inlined_call_operand.vmem [shape: f32[16,16], index: 1, kind: output, shape index: {}]  }
   0x1   :  { %v4_v0 = vld [vmem:[%s28_s0] ss:$0 sm:$0xff] }
   0x2   :  { %5 = vst [vmem:[%s29_s1] sm:$0xff] %v4_v0 }
   0x3   :  { %8 = vst [vmem:[%s29_s1 + $0x8] sm:$0xff] %v4_v0 }

// kernel: perceptual_module_forward.2
= control target key start
LH: loop header
LB: loop body
LE: loop exit
PB: predicated region body
PF: predicated region fallthrough
CT: control target
= control target key end

     0   :  { %s534_s15 = smov [#allocation3]   ;;  %s643_s0 = inlined_call_operand.vmem [shape: f32[72], index: 0, kind: input, shape index: {}]   ;;  %s644_s1 = inlined_call_operand.vmem [shape: f32[2,256], index: 1, kind: input, shape index: {}]   ;;  %s645_s2 = inlined_call_operand.vmem [shape: f32[2,4,3,256], index: 2, kind: input, shape index: {}]   ;;  %s646_s3 = inlined_call_operand.vmem [shape: f32[2,4,3,3,1], index: 3, kind: output, shape index: {}]  }
   0x1   :  { %s9_s14 = sshll.u32 %s643_s0, 4  ;;  %s10_s14 = int_to_ptr.vmem [resolvable:$true] %s9_s14 }
   0x2   :  { %12 = dma.vmem_to_smem %s10_s14, 16, %s534_s15, [#allocation2] }
   0x3   :  { %512 = dma.done.wait [#allocation2], 16 }
   0x4   :  { %513 = vsyncadd [#allocation2], 4294967280 }
   0x5   :  { %15 = sfence }
   0x6   :  { %s559_s16 = smov 0   ;;  %s561_s17 = smov 0  }
   0x7   :  { %s563_s18 = smov 0   ;;  %s565_s19 = smov 0  }
   0x8   :  { %s567_s20 = smov 0  }
   0x9 LB: > { %s30_s0 = sadd.s32 1, %s524_s18  ;;  %s33_s21 = sadd.s32 1, %s528_s19  ;;  %s532_s20 = sphi %s567_s20, %s21_s20   ;;  %s528_s19 = sphi %s565_s19, %s650_s19   ;;  %s524_s18 = sphi %s563_s18, %s649_s18   ;;  %s520_s17 = sphi %s561_s17, %s648_s17   ;;  %s516_s16 = sphi %s559_s16, %s647_s16  }
   0xa   : > { %p31_p0 = scmp.ge.s32.totalorder %s30_s0, 4  ;;  %p423_p1 = scmp.ge.s32.totalorder %s532_s20, 1 }
   0xb   : > { %p141_p2 = scmp.lt.s32.totalorder %s532_s20, 9 }
   0xc   : > { %s652_s0 = smov (%p31_p0, %s30_s0), 0  ;;  %s654_s21 = smov (!%p31_p0, %s33_s21), %s528_s19 }
   0xd   : > { %p142_p3 = pnand %p423_p1, %p141_p2  ;;  %p35_p4 = scmp.ge.s32.totalorder %s654_s21, 2 }
   0xe   : > { %p171_p5 = scmp.lt.s32.totalorder (!%p142_p3), %s520_s17, 1  ;;  %p173_p6 = scmp.lt.s32.totalorder (!%p142_p3), %s516_s16, 3 }
   0xf   : > { %s656_s21 = smov (%p35_p4, %s654_s21), 0  ;;  %145 = sbr.rel (%p142_p3) target bundleno = 180 (0xb4), region = 28 }
  0x10   : > { %s428_s22 = sshll.u32 (!%p142_p3), %s520_s17, 2 }
  0x11   : > { %s192_s25 = sadd.s32 (!%p142_p3), %s516_s16, %s428_s22 }
  0x12   : > { %s595_s27 = smul.u32 (!%p142_p3), 9, %s192_s25 }
  0x14   : > { %s658_s17 = smov (!%p171_p5, %s520_s17), 1  ;;  %s194_s4 = sld [smem:[#allocation3 + %s595_s27]]  ;;  %v190_v1 = vld [vmem:[%s644_s1] sm:$0xf]  ;;  %v535_v27 = vmov 0   ;;  %vm229_vm2 = vcmask 1042432  }
  0x15   : > { %s591_s23 = scalar_select %p173_p6, %s516_s16, 3  ;;  %vm236_vm10 = vcmask 2048  }
  0x16   : > { %s425_s24 = sshll.u32 %s658_s17, 3  ;;  %s195_s8 = sadd.s32 1, %s595_s27 }
  0x17   : > { %s424_s26 = sshll.u32 %s591_s23, 1  ;;  %s436_s29 = smul.u32 3, %s591_s23 }
  0x18   : > { %s177_s28 = sadd.s32 %s425_s24, %s424_s26  ;;  %s196_s9 = sld [smem:[#allocation3 + %s195_s8]] }
  0x19   : > { %s426_s30 = sshll.u32 %s177_s28, 2  ;;  %s197_s10 = sadd.s32 2, %s595_s27 }
  0x1a   : > { %s179_s7 = scalar_lea.vmem %s645_s2, %s426_s30  ;;  %s198_s11 = sld [smem:[#allocation3 + %s197_s10]]  ;;  %v201_v2 = vstv %s194_s4 }
  0x1b   : > { %v189_v0 = vld [vmem:[%s179_s7] sm:$0x77]  ;;  %s281_s12 = sadd.s32 6, %s595_s27  ;;  %s283_s14 = sadd.s32 7, %s595_s27  ;;  %v202_v3 = vsub.f32 %v190_v1, %v201_v2 }
  0x1c   : > { %222 = vst [vmem:[#allocation1] ss:$2 sm:$0xff] %v189_v0  ;;  %s282_s13 = sld [smem:[#allocation3 + %s281_s12]]  ;;  %s285_s16 = sadd.s32 8, %s595_s27 }
  0x1d   : > { %s284_s15 = sld [smem:[#allocation3 + %s283_s14]]  ;;  %s238_s26 = sadd.s32 3, %s595_s27  ;;  %v205_v9 = vmul.f32 %v202_v3, %v202_v3 }
  0x1e   : > { %s286_s25 = sld [smem:[#allocation3 + %s285_s16]]  ;;  %s240_s30 = sadd.s32 4, %s595_s27  ;;  %v203_v4 = vstv %s196_s9 }
  0x1f   : > { %s239_s28 = sld [smem:[#allocation3 + %s238_s26]]  ;;  %s242_s6 = sadd.s32 5, %s595_s27  ;;  %v204_v5 = vsub.f32 %v190_v1, %v203_v4 }
  0x20   : > { %s241_s5 = sld [smem:[#allocation3 + %s240_s30]]  ;;  %s437_s8 = smul.u32 12, %s658_s17 }
  0x21   : > { %s199_s7 = sadd.f32 0.05, %s198_s11  ;;  %v206_v10 = vmul.f32 %v204_v5, %v204_v5 }
  0x22   : > { %v289_v8 = vstv %s282_s13  ;;  %s243_s4 = sld [smem:[#allocation3 + %s242_s6]]  ;;  %s616_s9 = sadd.s32 %s437_s8, %s436_s29 }
  0x23   : > { %v223_v6 = vld.sshfl [vmem:[#allocation1] sm:$0xff pattern:$0x75316420]  ;;  %v224_v7 = vld.sshfl [vmem:[#allocation1 + $0x8] sm:$0xff pattern:$0x75316420]  ;;  %s200_s10 = smul.f32 %s199_s7, %s199_s7  ;;  %v290_v11 = vsub.f32 %v190_v1, %v289_v8  ;;  %v291_v12 = vstv %s284_s15 }
  0x24   : > { %266 = vst [vmem:[#allocation1] ss:$2 sm:$0xff] %v189_v0  ;;  %s287_s12 = sadd.f32 0.05, %s286_s25  ;;  %v292_v13 = vsub.f32 %v190_v1, %v291_v12  ;;  %v429_v14 = vrot.slane %v206_v10, 9  ;;  %s427_s29 = sshll.u32 %s616_s9, 2 }
  0x25   : > { %v212_v15 = vstv %s200_s10  ;;  %v246_v16 = vstv %s239_s28  ;;  %v293_v17 = vmul.f32 %v290_v11, %v290_v11  ;;  %s188_s14 = scalar_lea.vmem %s646_s3, %s427_s29 }
  0x26   : > { %s288_s27 = smul.f32 %s287_s12, %s287_s12  ;;  %v294_v18 = vmul.f32 %v292_v13, %v292_v13  ;;  %v247_v19 = vsub.f32 %v190_v1, %v246_v16  ;;  %v248_v20 = vstv %s241_s5  ;;  %v211_v21 = vadd.f32 %v429_v14, %v205_v9 }
  0x27   : > { %v249_v22 = vsub.f32 %v190_v1, %v248_v20 }
  0x28   : > { %v432_v23 = vrot.slane %v294_v18, 9  ;;  %vm213_vm0 = vcmp.le.f32.partialorder %v211_v21, %v212_v15  ;;  %v300_v24 = vstv %s288_s27  ;;  %s244_s17 = sadd.f32 0.05, %s243_s4  ;;  %v250_v25 = vmul.f32 %v247_v19, %v247_v19 }
  0x29   : > { %v251_v26 = vmul.f32 %v249_v22, %v249_v22  ;;  %v214_v28 = vsel %vm213_vm0, 1, %v535_v27 }
  0x2a   : > { %v299_v30 = vadd.f32 %v432_v23, %v293_v17  ;;  %v215_v31 = vperm.slane %v214_v28, 0  ;;  %v216_v32 = vperm.slane %v214_v28, 2  ;;  %s245_s23 = smul.f32 %s244_s17, %s244_s17 }
  0x2b   : > { %v267_v29 = vld.sshfl [vmem:[#allocation1] sm:$0xff pattern:$0x75316420]  ;;  %v268_v33 = vld.sshfl [vmem:[#allocation1 + $0x8] sm:$0xff pattern:$0x75316420] }
  0x2c   : > { %v430_v34 = vrot.slane %v251_v26, 9  ;;  %309 = vst [vmem:[#allocation1] ss:$2 sm:$0xff] %v189_v0  ;;  %vm301_vm1 = vcmp.le.f32.partialorder %v299_v30, %v300_v24  ;;  %v217_v35 = vperm.slane %v215_v31, 0  ;;  %v218_v36 = vperm.slane %v216_v32, 0 }
  0x2d   : > { %v302_v37 = vsel %vm301_vm1, 1, %v535_v27  ;;  %v257_v41 = vstv %s245_s23 }
  0x2e   : > { %v256_v38 = vadd.f32 %v430_v34, %v250_v25  ;;  %v303_v39 = vperm.slane %v302_v37, 0  ;;  %v304_v40 = vperm.slane %v302_v37, 2  ;;  %vm219_vm3 = vcmp.eq.s32.totalorder %v217_v35, 1 }
  0x2f   : > { %vm220_vm4 = vcmp.eq.s32.totalorder %v218_v36, 1  ;;  %v227_v42 = vsel %vm219_vm3, %v223_v6, 0.0 }
  0x30   : > { %vm258_vm5 = vcmp.le.f32.partialorder %v256_v38, %v257_v41  ;;  %v228_v43 = vsel %vm220_vm4, %v224_v7, 0.0  ;;  %v305_v44 = vperm.slane %v303_v39, 0  ;;  %v306_v45 = vperm.slane %v304_v40, 0 }
  0x31   : > { %v230_v46 = vsel %vm229_vm2, %v227_v42, 0.0  ;;  %v231_v47 = vsel %vm229_vm2, %v228_v43, 0.0  ;;  %v259_v48 = vsel %vm258_vm5, 1, %v535_v27 }
  0x32   : > { %v232_v49 = vadd.f32 %v231_v47, %v230_v46  ;;  %vm307_vm6 = vcmp.eq.s32.totalorder %v305_v44, 1  ;;  %vm308_vm7 = vcmp.eq.s32.totalorder %v306_v45, 1  ;;  %v260_v50 = vperm.slane %v259_v48, 0 }
  0x33   : > { %v310_v51 = vld.sshfl [vmem:[#allocation1] sm:$0xff pattern:$0x75316420]  ;;  %v311_v52 = vld.sshfl [vmem:[#allocation1 + $0x8] sm:$0xff pattern:$0x75316420] }
  0x34   : > { %233 = vadd.xlane.f32.xlu0 %v232_v49  ;;  %v314_v53 = vsel %vm307_vm6, %v310_v51, 0.0  ;;  %v315_v54 = vsel %vm308_vm7, %v311_v52, 0.0  ;;  %v261_v55 = vperm.slane %v259_v48, 2  ;;  %v262_v56 = vperm.slane %v260_v50, 0 }
  0x35   : > { %v316_v57 = vsel %vm229_vm2, %v314_v53, 0.0  ;;  %v317_v58 = vsel %vm229_vm2, %v315_v54, 0.0 }
  0x36   : > { %v318_v59 = vadd.f32 %v317_v58, %v316_v57  ;;  %v263_v60 = vperm.slane %v261_v55, 0  ;;  %vm264_vm8 = vcmp.eq.s32.totalorder %v262_v56, 1 }
  0x37   : > { %v271_v61 = vsel %vm264_vm8, %v267_v29, 0.0 }
  0x38   : > { %319 = vadd.xlane.f32.xlu1 %v318_v59  ;;  %vm265_vm9 = vcmp.eq.s32.totalorder %v263_v60, 1  ;;  %v273_v62 = vsel %vm229_vm2, %v271_v61, 0.0 }
  0x39   : > { %v272_v63 = vsel %vm265_vm9, %v268_v33, 0.0 }
  0x3a   : > { %v274_v0 = vsel %vm229_vm2, %v272_v63, 0.0 }
  0x3b   : > { %v275_v1 = vadd.f32 %v274_v0, %v273_v62 }
  0x3d   : > { %276 = vadd.xlane.f32.xlu0 %v275_v1 }
  0xa7   : > { %v234_v2 = vpop.xlane.xlu0 %233 }
  0xa8   : > { %v235_v3 = vmul.f32 0.00390625, %v234_v2 }
  0xaa   : > { %237 = vst.msk [vmem:[%s188_s14] sm:$0x7] %vm236_vm10, %v235_v3 }
  0xab   : > { %v320_v4 = vpop.xlane.xlu1 %319 }
  0xac   : > { %v321_v5 = vmul.f32 0.00390625, %v320_v4 }
  0xae   : > { %433 = vst.msk [vmem:[%s188_s14 + $0x8] sm:$0x7] %vm236_vm10, %v321_v5 }
  0xb0   : > { %v277_v6 = vpop.xlane.xlu0 %276 }
  0xb1   : > { %v278_v7 = vmul.f32 0.00390625, %v277_v6 }
  0xb3   : > { %431 = vst.msk [vmem:[%s188_s14 + $0x4] sm:$0x7] %vm236_vm10, %v278_v7 }
  0xb4 PF: > { %s21_s20 = sadd.s32 1, %s532_s20   ;;  %s647_s16 = smov %s524_s18 }
  0xb5   : > { %p18_p7 = scmp.ge.s32.totalorder %s21_s20, 10   ;;  %s648_s17 = smov %s528_s19 }
  0xb6   : > { %s649_s18 = smov %s652_s0  ;;  %s650_s19 = smov %s656_s21 }
  0xb7   :  { %20 = sbr.rel (!%p18_p7) target bundleno = 9 (0x9), region = 60 }

// kernel: perceptual_module_forward.3
= control target key start
LH: loop header
LB: loop body
LE: loop exit
PB: predicated region body
PF: predicated region fallthrough
CT: control target
= control target key end

     0   :  { %12 = vsyncpa [#allocation3], 0  ;;  %vm28_vm0 = vcmask 95232   ;;  %s521_s0 = inlined_call_operand.vmem [shape: f32[6,12], index: 0, kind: input, shape index: {}]   ;;  %s522_s1 = inlined_call_operand.vmem [shape: f32[8,12], index: 1, kind: input, shape index: {}]   ;;  %s523_s2 = inlined_call_operand.vmem [shape: f32[1,8], index: 2, kind: input, shape index: {}]   ;;  %s524_s3 = inlined_call_operand.vmem [shape: s32[6,1], index: 3, kind: input, shape index: {}]   ;;  %s525_s4 = inlined_call_operand.hbm [shape: f32[1,1], index: 4, kind: output, shape index: {0}]   ;;  %s526_s5 = inlined_call_operand.hbm [shape: f32[1,1], index: 5, kind: output, shape index: {1}]   ;;  %s527_s6 = inlined_call_operand.hbm [shape: s32[6,1], index: 6, kind: output, shape index: {2}]  }
   0x1   :  { %v22_v0 = vld [vmem:[%s521_s0] sm:$0x3f] }
   0x2   :  { %v308_v1 = vld [vmem:[%s522_s1] ss:$0 sm:$0xff]  ;;  %v309_v2 = vld [vmem:[%s522_s1 + $0x2] ss:$0 sm:$0xff]  ;;  %v310_v4 = vld [vmem:[%s522_s1 + $0x4] ss:$0 sm:$0xff] }
   0x3   :  { %v27_v3 = vmul.f32 %v308_v1, %v22_v0  ;;  %v46_v5 = vmul.f32 %v309_v2, %v22_v0  ;;  %v311_v6 = vld [vmem:[%s522_s1 + $0x1] ss:$0 sm:$0xff]  ;;  %v312_v7 = vld [vmem:[%s522_s1 + $0x3] ss:$0 sm:$0xff]  ;;  %v64_v9 = vmul.f32 %v310_v4, %v22_v0  ;;  %v313_v10 = vld [vmem:[%s522_s1 + $0x5] ss:$0 sm:$0xff] }
   0x4   :  { %v37_v13 = vmul.f32 %v311_v6, %v22_v0  ;;  %v55_v14 = vmul.f32 %v312_v7, %v22_v0 }
   0x5   :  { %v29_v8 = vsel %vm28_vm0, %v27_v3, 0.0  ;;  %v47_v11 = vsel %vm28_vm0, %v46_v5, 0.0  ;;  %v65_v12 = vsel %vm28_vm0, %v64_v9, 0.0 }
   0x6   :  { %30 = vadd.xlane.f32.xlu0 %v29_v8  ;;  %48 = vadd.xlane.f32.xlu1 %v47_v11 }
   0x7   :  { %66 = vadd.xlane.f32.xlu2 %v65_v12 }
   0x8   :  { %13 = vsyncpa [#allocation5], 0  ;;  %v73_v15 = vmul.f32 %v313_v10, %v22_v0  ;;  %v38_v16 = vsel %vm28_vm0, %v37_v13, 0.0  ;;  %v314_v17 = vld [vmem:[%s522_s1 + $0x6] ss:$0 sm:$0xff]  ;;  %v56_v18 = vsel %vm28_vm0, %v55_v14, 0.0  ;;  %v23_v25 = vlaneseq }
   0x9   :  { %v315_v19 = vld [vmem:[%s522_s1 + $0x7] ss:$0 sm:$0xff]  ;;  %v82_v21 = vmul.f32 %v314_v17, %v22_v0  ;;  %v316_v49 = vld [vmem:[%s523_s2] ss:$0 sm:$0xff]  ;;  %vm103_vm9 = vcmask 62464   ;;  %v401_v54 = vmov 0  }
   0xa   :  { %v74_v20 = vsel %vm28_vm0, %v73_v15, 0.0  ;;  %v91_v22 = vmul.f32 %v315_v19, %v22_v0  ;;  %v476_v28 = vand.u32 127, %v23_v25  ;;  %v493_v53 = vld [vmem:[%s524_s3] sm:$0x3f]  ;;  %306 = vset.pattern.permute.xlu1 %v401_v54  ;;  %307 = vset.pattern.permute.xlu0 %v401_v54  ;;  %v402_v14 = vmov 0.0   ;;  %s403_s3 = smov [#allocation2]  }
   0xb   :  { %v83_v23 = vsel %vm28_vm0, %v82_v21, 0.0  ;;  %vm118_vm10 = vcmp.gt.s32.totalorder %v493_v53, 0  ;;  %vm131_vm15 = vcmp.ge.s32.totalorder %v493_v53, 0  ;;  %s248_s17 = sshll.u32 %s403_s3, 4  ;;  %s250_s20 = sshll.u32 %s525_s4, 4  ;;  %s249_s17 = int_to_ptr.vmem [resolvable:$true] %s248_s17  ;;  %s251_s20 = int_to_ptr.hbm [resolvable:$true] %s250_s20 }
   0xc   :  { %v92_v24 = vsel %vm28_vm0, %v91_v22, 0.0  ;;  %vm32_vm1 = vcmp.eq.s32.totalorder %v476_v28, 0  ;;  %vm41_vm2 = vcmp.eq.s32.totalorder %v476_v28, 1  ;;  %vm50_vm3 = vcmp.eq.s32.totalorder %v476_v28, 2  ;;  %s404_s23 = smov [#allocation4]   ;;  %s261_s27 = sshll.u32 %s526_s5, 4  ;;  %s262_s27 = int_to_ptr.hbm [resolvable:$true] %s261_s27 }
   0xd   :  { %vm59_vm4 = vcmp.eq.s32.totalorder %v476_v28, 3  ;;  %vm68_vm5 = vcmp.eq.s32.totalorder %v476_v28, 4  ;;  %vm77_vm6 = vcmp.eq.s32.totalorder %v476_v28, 5  ;;  %vm86_vm7 = vcmp.eq.s32.totalorder %v476_v28, 6  ;;  %s259_s24 = sshll.u32 %s404_s23, 4  ;;  %s405_s28 = smov [#allocation6]   ;;  %s260_s24 = int_to_ptr.vmem [resolvable:$true] %s259_s24 }
   0xe   :  { %39 = vadd.xlane.f32.xlu0 %v38_v16  ;;  %57 = vadd.xlane.f32.xlu1 %v56_v18  ;;  %vm95_vm8 = vcmp.eq.s32.totalorder %v476_v28, 7  ;;  %v119_v55 = vsel %vm118_vm10, %v493_v53, 0  ;;  %vm132_vm0 = vcmp.lt.s32.totalorder %v493_v53, 8  ;;  %v291_v17 = vsel %vm131_vm15, 1.0, %v402_v14  ;;  %s270_s29 = sshll.u32 %s405_s28, 4  ;;  %s272_s7 = sshll.u32 %s527_s6, 4  ;;  %s271_s29 = int_to_ptr.vmem [resolvable:$true] %s270_s29  ;;  %s273_s7 = int_to_ptr.hbm [resolvable:$true] %s272_s7 }
   0xf   :  { %75 = vadd.xlane.f32.xlu2 %v74_v20  ;;  %vm120_vm11 = vcmp.lt.s32.totalorder %v119_v55, 7 }
  0x10   :  { %v121_v56 = vsel %vm120_vm11, %v119_v55, 7 }
  0x16   :  { %84 = vadd.xlane.f32.xlu0 %v83_v23  ;;  %93 = vadd.xlane.f32.xlu1 %v92_v24 }
  0x2f   :  { %123 = vperm.xlu1 %306, %v121_v56  }
  0x79   :  { %v31_v26 = vpop.xlane.xlu0 %30  ;;  %v49_v27 = vpop.xlane.xlu1 %48 }
  0x7a   :  { %v67_v29 = vpop.xlane.xlu2 %66  ;;  %v33_v31 = vsel %vm32_vm1, %v31_v26, 0.0  ;;  %v51_v35 = vsel %vm50_vm3, %v49_v27, 0.0  ;;  %vm133_vm1 = vmand %vm131_vm15, %vm132_vm0 }
  0x7b   :  { %v69_v40 = vsel %vm68_vm5, %v67_v29, 0.0  ;;  %v290_v15 = vsel %vm133_vm1, 1.0, %v402_v14 }
  0x81   :  { %v40_v30 = vpop.xlane.xlu0 %39  ;;  %v58_v33 = vpop.xlane.xlu1 %57 }
  0x82   :  { %v42_v32 = vsel %vm41_vm2, %v40_v30, 0.0  ;;  %v60_v36 = vsel %vm59_vm4, %v58_v33, 0.0  ;;  %v76_v38 = vpop.xlane.xlu2 %75  ;;  %vm136_vm2 = vcmask 5120  }
  0x83   :  { %v43_v34 = vadd.f32 %v42_v32, %v33_v31  ;;  %v78_v41 = vsel %vm77_vm6, %v76_v38, 0.0  ;;  %v137_v16 = vsel %vm136_vm2, %v290_v15, 0.0  ;;  %v200_v18 = vsel %vm136_vm2, %v291_v17, 0.0 }
  0x85   :  { %v52_v37 = vadd.f32 %v51_v35, %v43_v34 }
  0x87   :  { %v61_v39 = vadd.f32 %v60_v36, %v52_v37 }
  0x89   :  { %v70_v42 = vadd.f32 %v69_v40, %v61_v39  ;;  %v85_v43 = vpop.xlane.xlu0 %84  ;;  %v94_v45 = vpop.xlane.xlu1 %93 }
  0x8a   :  { %v87_v44 = vsel %vm86_vm7, %v85_v43, 0.0  ;;  %v96_v47 = vsel %vm95_vm8, %v94_v45, 0.0 }
  0x8b   :  { %v79_v46 = vadd.f32 %v78_v41, %v70_v42 }
  0x8d   :  { %v88_v48 = vadd.f32 %v87_v44, %v79_v46 }
  0x8f   :  { %v97_v50 = vadd.f32 %v96_v47, %v88_v48 }
  0x91   :  { %v102_v51 = vadd.f32 %v316_v49, %v97_v50 }
  0x93   :  { %v104_v52 = vsel %vm103_vm9, %v102_v51, -inf }
  0x94   :  { %105 = vmax.xlane.f32.xlu2 %v104_v52 }
  0xa1   :  { %v124_v9 = vpop.permute.xlu1 %123 }
  0xa2   :  { %vm125_vm14 = vcmp.eq.s32.totalorder %v476_v28, %v124_v9 }
 0x107   :  { %v106_v57 = vpop.xlane.xlu2 %105 }
 0x108   :  { %v107_v58 = vsub.f32 %v102_v51, %v106_v57  ;;  %vm178_vm12 = vcmp.eq.f32.partialorder %v102_v51, %v106_v57 }
 0x109   :  { %v179_v59 = vsel %vm178_vm12, %v476_v28, 8 }
 0x10a   :  { %v108_v60 = vmul.f32 1.442695, %v107_v58  ;;  %v180_v61 = vsel %vm103_vm9, %v179_v59, 2147483647 }
 0x10b   :  { %v182_v62 = vshra.s32 %v180_v61, 16  ;;  %v181_v2 = vand.u32 65535, %v180_v61 }
 0x10c   :  { %317 = vpow2.f32 %v108_v60 }
 0x10d   :  { %v184_v63 = vcvt.s32.f32 %v182_v62  ;;  %v183_v4 = vcvt.s32.f32 %v181_v2 }
 0x10f   :  { %185 = vmin.xlane.f32.xlu2 %v184_v63 }
 0x112   :  { %v318_v0 = vpop.eup %317 }
 0x113   :  { %v110_v1 = vsel %vm103_vm9, %v318_v0, 0.0 }
 0x114   :  { %111 = vadd.xlane.f32.xlu0 %v110_v1 }
 0x182   :  { %v186_v3 = vpop.xlane.xlu2 %185 }
 0x183   :  { %vm187_vm13 = vcmp.eq.f32.partialorder %v184_v63, %v186_v3  ;;  %v192_v19 = vcvt.f32.s32 %v186_v3 }
 0x184   :  { %v188_v5 = vsel %vm187_vm13, %v183_v4, inf }
 0x185   :  { %189 = vmin.xlane.f32.xlu2 %v188_v5  ;;  %v193_v21 = vshll.u32 %v192_v19, 16 }
 0x187   :  { %v112_v6 = vpop.xlane.xlu0 %111 }
 0x188   :  { %319 = vlog2.f32 %v112_v6 }
 0x18e   :  { %v320_v7 = vpop.eup %319 }
 0x18f   :  { %v114_v8 = vmul.f32 0.6931472, %v320_v7 }
 0x191   :  { %v115_v10 = vadd.f32 %v114_v8, %v106_v57 }
 0x193   :  { %v116_v11 = vsub.f32 %v102_v51, %v115_v10 }
 0x195   :  { %v126_v12 = vsel %vm125_vm14, %v116_v11, 0.0 }
 0x196   :  { %v127_v13 = vsel %vm103_vm9, %v126_v12, 0.0  ;;  %vm176_vm9 = vcmask 0  }
 0x197   :  { %128 = vadd.xlane.f32.xlu0 %v127_v13 }
 0x19f   :  { %138 = vadd.xlane.f32.xlu0 %v137_v16 }
 0x1a7   :  { %201 = vadd.xlane.f32.xlu0 %v200_v18 }
 0x1f8   :  { %v190_v20 = vpop.xlane.xlu2 %189 }
 0x1f9   :  { %v191_v22 = vcvt.f32.s32 %v190_v20 }
 0x1fb   :  { %v194_v23 = vadd.s32 %v193_v21, %v191_v22 }
 0x1fd   :  { %vm195_vm3 = vcmp.lt.s32.totalorder %v194_v23, 7 }
 0x1fe   :  { %v196_v24 = vsel %vm195_vm3, %v194_v23, 7 }
 0x1ff   :  { %197 = vst.msk [vmem:[#allocation6] sm:$0x3f] %vm136_vm2, %v196_v24  ;;  %vm211_vm4 = vcmp.eq.s32.totalorder %v196_v24, %v493_v53 }
 0x200   :  { %v292_v29 = vsel %vm211_vm4, 1.0, %v402_v14 }
 0x201   :  { %v214_v31 = vmul.f32 %v292_v29, %v291_v17 }
 0x203   :  { %v215_v34 = vsel %vm136_vm2, %v214_v31, 0.0 }
 0x20a   :  { %v129_v25 = vpop.xlane.xlu0 %128 }
 0x20b   :  { %v130_v26 = vsub.f32 0.0, %v129_v25 }
 0x20d   :  { %v148_v27 = vmul.f32 %v290_v15, %v130_v26 }
 0x20f   :  { %v149_v28 = vsel %vm136_vm2, %v148_v27, 0.0 }
 0x210   :  { %150 = vadd.xlane.f32.xlu2 %v149_v28 }
 0x212   :  { %v139_v30 = vpop.xlane.xlu0 %138 }
 0x213   :  { %v140_v32 = vrot.slane %v139_v30, 4 }
 0x215   :  { %v141_v33 = vadd.f32 %v140_v32, %v139_v30 }
 0x217   :  { %v142_v35 = vrot.slane %v141_v33, 2 }
 0x218   :  { %216 = vadd.xlane.f32.xlu2 %v215_v34 }
 0x219   :  { %v143_v36 = vadd.f32 %v142_v35, %v141_v33 }
 0x21a   :  { %v202_v39 = vpop.xlane.xlu0 %201 }
 0x21b   :  { %v144_v37 = vrot.slane %v143_v36, 1  ;;  %v203_v40 = vrot.slane %v202_v39, 4 }
 0x21d   :  { %v145_v38 = vadd.f32 %v144_v37, %v143_v36  ;;  %v204_v41 = vadd.f32 %v203_v40, %v202_v39 }
 0x21f   :  { %293 = vpush %v145_v38  ;;  %v205_v42 = vrot.slane %v204_v41, 2 }
 0x221   :  { %v206_v46 = vadd.f32 %v205_v42, %v204_v41 }
 0x223   :  { %v207_v50 = vrot.slane %v206_v46, 1 }
 0x225   :  { %v208_v55 = vadd.f32 %v207_v50, %v206_v46 }
 0x250   :  { %s294_s2 = spop %293 }
 0x251   :  { %v147_v60 = vstv %s294_s2 }
 0x252   :  { %v160_v61 = vadd.f32 1e-10, %v147_v60 }
 0x254   :  { %321 = vrcp.f32 %v160_v61  ;;  %vm166_vm5 = vweird.f32 %v160_v61  ;;  %v172_v2 = vand.u32 2147483648, %v160_v61  ;;  %v170_v4 = vand.u32 2147483647, %v160_v61 }
 0x256   :  { %v173_v5 = vor.u32 1.1754944e-38, %v172_v2  ;;  %vm171_vm8 = vcmp.eq.f32.partialorder %v170_v4, 8.507059e+37 }
 0x25a   :  { %v322_v62 = vpop.eup %321 }
 0x25b   :  { %v162_v63 = vmul.f32 %v322_v62, %v160_v61  ;;  %vm167_vm6 = vweird.f32 %v322_v62 }
 0x25c   :  { %vm168_vm7 = vmor %vm166_vm5, %vm167_vm6 }
 0x25d   :  { %v163_v0 = vsub.f32 1.0, %v162_v63 }
 0x25f   :  { %v164_v1 = vmul.f32 %v322_v62, %v163_v0 }
 0x261   :  { %v165_v3 = vadd.f32 %v322_v62, %v164_v1 }
 0x263   :  { %v169_v6 = vsel %vm168_vm7, %v322_v62, %v165_v3 }
 0x264   :  { %v174_v8 = vsel %vm171_vm8, %v173_v5, %v169_v6 }
 0x283   :  { %v151_v43 = vpop.xlane.xlu2 %150 }
 0x284   :  { %v152_v44 = vrot.slane %v151_v43, 4 }
 0x286   :  { %v153_v45 = vadd.f32 %v152_v44, %v151_v43 }
 0x288   :  { %v154_v47 = vrot.slane %v153_v45, 2 }
 0x28a   :  { %v155_v48 = vadd.f32 %v154_v47, %v153_v45 }
 0x28b   :  { %v217_v49 = vpop.xlane.xlu2 %216 }
 0x28c   :  { %v218_v51 = vrot.slane %v217_v49, 4  ;;  %v156_v52 = vrot.slane %v155_v48, 1 }
 0x28e   :  { %v219_v53 = vadd.f32 %v218_v51, %v217_v49  ;;  %v157_v54 = vadd.f32 %v156_v52, %v155_v48 }
 0x290   :  { %v220_v56 = vrot.slane %v219_v53, 2  ;;  %295 = vpush %v157_v54 }
 0x291   :  { %297 = vpush %v208_v55 }
 0x292   :  { %v221_v57 = vadd.f32 %v220_v56, %v219_v53 }
 0x294   :  { %v222_v58 = vrot.slane %v221_v57, 1 }
 0x296   :  { %v223_v59 = vadd.f32 %v222_v58, %v221_v57 }
 0x298   :  { %299 = vpush %v223_v59 }
 0x2c1   :  { %s296_s21 = spop %295 }
 0x2c2   :  { %v159_v7 = vstv %s296_s21  ;;  %s298_s22 = spop %297 }
 0x2c3   :  { %v175_v9 = vmul.f32 %v174_v8, %v159_v7  ;;  %v210_v10 = vstv %s298_s22 }
 0x2c4   :  { %v226_v11 = vadd.f32 1e-10, %v210_v10 }
 0x2c5   :  { %177 = vst.msk [vmem:[#allocation2] sm:$0x1] %vm176_vm9, %v175_v9 }
 0x2c6   :  { %323 = vrcp.f32 %v226_v11  ;;  %253 = dma.vmem_to_hbm [thread:$0]  %s249_s17, 16, %s251_s20, [#allocation3]   ;;  %v238_v15 = vand.u32 2147483648, %v226_v11  ;;  %v236_v17 = vand.u32 2147483647, %v226_v11  ;;  %vm232_vm11 = vweird.f32 %v226_v11 }
 0x2c8   :  { %v239_v19 = vor.u32 1.1754944e-38, %v238_v15  ;;  %vm237_vm13 = vcmp.eq.f32.partialorder %v236_v17, 8.507059e+37 }
 0x2c9   :  { %s300_s4 = spop %299 }
 0x2ca   :  { %v225_v21 = vstv %s300_s4 }
 0x2cc   :  { %v324_v12 = vpop.eup %323 }
 0x2cd   :  { %v228_v13 = vmul.f32 %v324_v12, %v226_v11  ;;  %vm233_vm10 = vweird.f32 %v324_v12 }
 0x2ce   :  { %vm234_vm12 = vmor %vm232_vm11, %vm233_vm10 }
 0x2cf   :  { %v229_v14 = vsub.f32 1.0, %v228_v13 }
 0x2d1   :  { %v230_v16 = vmul.f32 %v324_v12, %v229_v14 }
 0x2d3   :  { %v231_v18 = vadd.f32 %v324_v12, %v230_v16 }
 0x2d5   :  { %v235_v20 = vsel %vm234_vm12, %v324_v12, %v231_v18 }
 0x2d6   :  { %v240_v22 = vsel %vm237_vm13, %v239_v19, %v235_v20 }
 0x2d7   :  { %v241_v23 = vmul.f32 %v240_v22, %v225_v21 }
 0x2d9   :  { %242 = vst.msk [vmem:[#allocation4] sm:$0x1] %vm176_vm9, %v241_v23 }
 0x2da   :  { %264 = dma.vmem_to_hbm [thread:$0]  %s260_s24, 16, %s262_s27, [#allocation5]  }
 0x2db   :  { %275 = dma.vmem_to_hbm [thread:$0]  %s271_s29, 128, %s273_s7, [#allocation5]  }
 0x2dc   :  { %397 = dma.done.wait [#allocation3], 16  }
 0x2dd   :  { %398 = vsyncadd [#allocation3], 4294967280 }
 0x2de   :  { %399 = dma.done.wait [#allocation5], 144  }
 0x2df   :  { %400 = vsyncadd [#allocation5], 4294967152 }
 0x2e0   :  { %288 = vsyncpa [#allocation3], 1 }
 0x2e1   :  { %289 = vsyncpa [#allocation5], 1 }

</bundles_post_ra>
